<compile_context>
chip_gen: v7x
topology: tpu7x:2x2x1
jax: 0.10.0
libtpu: 0.0.40
codegen_flags: <defaults>
</compile_context>

<pallas_src>
import numpy as np
import jax
import jax.numpy as jnp
from jax import lax
from jax.experimental import pallas as pl
from jax.experimental.pallas import tpu as pltpu

# ---------------------------------------------------------------------------
# Configuration (scaled-down EEGNetModel; defaults keep d*f1 == f2 so block3's
# grouped conv is depthwise, exactly as in the PyTorch defaults 2*16 == 32).
# ---------------------------------------------------------------------------
N       = 2        # batch
CHANS   = 8        # chans  (H of NCHW)
T       = 128      # time_points (W of NCHW)
CLASSES = 4
KT      = 8        # temp_kernel
F1      = 8
D       = 2
DFL     = D * F1   # 16
F2      = 16       # == DFL  -> depthwise conv in block3
K3      = 16       # hard-coded kernel width of block3 depthwise conv
PK1     = 4
PK2     = 4
T1      = T // PK1               # 32
T2      = T1 // PK2              # 8
LINEAR  = T // (PK1 * PK2) * F2  # 128
BN_EPS  = 1e-5

# PyTorch Conv2d(padding='same') asymmetric padding: left = (k-1)//2
PAD1_L = (KT - 1) // 2
PAD1_R = (KT - 1) - PAD1_L
PAD3_L = (K3 - 1) // 2
PAD3_R = (K3 - 1) - PAD3_L

assert DFL == F2, "block3 grouped conv is depthwise only when d*f1 == f2"
assert T % PK1 == 0 and T1 % PK2 == 0
assert T1 + K3 - 1 <= T          # padded pooled row fits in one 128-lane slab
assert LINEAR == F2 * T2
assert T2 * CLASSES == T1        # lets p2rep / gmat / kmask share one 32-row pack
assert KT <= T1


def _elu(v):
    # clamp the exp argument so the unselected branch never produces inf
    return jnp.where(v > 0, v, jnp.exp(jnp.minimum(v, 0.0)) - 1.0)


def _pack_cols(arrs):
    """Concat 2-D arrays (same row count) along columns, padding every segment
    to a lane-aligned (multiple-of-128) width.  Returns (packed, offsets)."""
    rows = arrs[0].shape[0]
    segs, offs, off = [], [], 0
    for a in arrs:
        assert a.shape[0] == rows
        w = int(a.shape[1])
        wpad = -(-w // 128) * 128
        if wpad > w:
            a = jnp.concatenate([a, jnp.zeros((rows, wpad - w), a.dtype)], axis=1)
        segs.append(a)
        offs.append(off)
        off += wpad
    return jnp.concatenate(segs, axis=1), offs


# ---------------------------------------------------------------------------
# Host-side constant folding: BN folded into conv weights, banded depthwise
# weight, pooling / classifier matmul constants, boundary masks, all packed.
# ---------------------------------------------------------------------------
def build_consts(p, bb):
    f32 = jnp.float32
    R = bb * F2
    g = np.arange(DFL) // D                      # input (group) channel per output ch
    s1g, b1g, w1g = p['s1'][g], p['b1'][g], p['w1'][g]

    # fused block1+BN1+block2+BN2 weight, block-diagonal over batch
    coeff = (p['s2'][:, None, None] * s1g[:, None, None]
             * w1g[:, :, None] * p['w2'][:, None, :])           # (DFL, KT, CHANS)
    eye_b = jnp.eye(bb, dtype=f32)
    w12 = (eye_b[:, None, None, :, None]
           * coeff[None, :, :, None, :]).reshape(bb * DFL, KT * bb * CHANS)
    b12 = p['s2'] * b1g * jnp.sum(p['w2'], axis=1) + p['b2']    # (DFL,)
    b12bc = jnp.broadcast_to(jnp.tile(b12, bb)[:, None], (bb * DFL, T))

    # AvgPool1 as matmul; output column p lands at lane PAD3_L + p (pre-padded
    # for block3's 'same' conv; all other lanes are exactly zero)
    t_i = jnp.arange(T)
    p1w = jnp.where(t_i[None, :] == PAD3_L + t_i[:, None] // PK1,
                    1.0 / PK1, 0.0).astype(f32)                 # (T, T)

    # banded depthwise weight for block3's conv, done on the MXU:
    # w3band[r, j*R + r'] = w3[r % F2, j] * (r' == r)
    w3t = jnp.tile(p['w3'], (bb, 1))                            # (R, K3)
    eye_r = jnp.eye(R, dtype=f32)
    w3band = (w3t[:, :, None] * eye_r[:, None, :]).reshape(R, K3 * R)

    # pointwise 1x1 conv with BN3 folded, block-diagonal over batch
    w4b = jnp.kron(eye_b, p['s3'][:, None] * p['w4'])           # (R, R)
    b3bc = jnp.broadcast_to(jnp.tile(p['b3'], bb)[:, None], (R, T1))

    # AvgPool2 folded with the flatten-expand matrix: p2rep = p2 @ rep
    p2 = jnp.where(jnp.arange(T1)[:, None] // PK2 == jnp.arange(T2)[None, :],
                   1.0 / PK2, 0.0).astype(f32)                  # (T1, T2)
    rep = jnp.repeat(jnp.eye(T2, dtype=f32), CLASSES, axis=1)   # (T2, T2*CLS)
    p2rep = p2 @ rep                                            # (T1, T2*CLS)

    # classifier: flatten order of (F2,1,T2) is f*T2+t -> wfcl[b*F2+f, t*CLS+c]
    wfcl = jnp.transpose(p['wfc'].reshape(CLASSES, F2, T2), (1, 2, 0))
    wfcl = jnp.tile(wfcl.reshape(F2, T2 * CLASSES), (bb, 1))    # (R, T2*CLS)
    gmat = jnp.tile(jnp.eye(CLASSES, dtype=f32), (T2, 1))       # (T2*CLS, CLS)
    sbt = jnp.repeat(eye_b, F2, axis=1)                         # (bb, R)
    bfc_t = jnp.broadcast_to(p['bfc'][None, :], (bb, CLASSES))  # (bb, CLS)

    # im2col boundary masks, one row per temporal tap (rows padded to T1)
    km = np.zeros((T1, T), np.float32)
    for k in range(KT):
        lo = max(0, PAD1_L - k)
        hi = min(T - 1, T - 1 + PAD1_L - k)
        km[k, lo:hi + 1] = 1.0
    km = jnp.asarray(km)

    cpack, coffs = _pack_cols([w12, b12bc, w3band, w4b, b3bc, wfcl])  # rows R
    qpack, qoffs = _pack_cols([p2rep, gmat, km])                      # rows T1
    spack, soffs = _pack_cols([sbt, bfc_t])                           # rows bb
    return dict(cpack=cpack, qpack=qpack, p1w=p1w, spack=spack,
                coffs=coffs, qoffs=qoffs, soffs=soffs)


# ---------------------------------------------------------------------------
# Pallas kernel wrapper: whole batch (or a batch tile) per grid step.
# ---------------------------------------------------------------------------
def eegnet_forward_pallas(x, p, batch_tile=None):
    """x: (N, 1, CHANS, T) float32 -> logits (N, CLASSES)."""
    n = x.shape[0]
    bb = n if batch_tile is None else batch_tile
    # keep bb == n for small batches (grid=(1,)); if tiling a large batch, bb
    # must be a multiple of 8 and should stay <= 16 (O(bb^2) block-diag consts).
    assert n % bb == 0 and (bb == n or bb % 8 == 0)
    consts = build_consts(p, bb)

    bbch = bb * CHANS
    R = bb * F2
    w12_off, b12_off, w3_off, w4_off, b3_off, wfc_off = consts['coffs']
    p2rep_off, gmat_off, km_off = consts['qoffs']
    sbt_off, bfc_off = consts['soffs']

    def kernel(x_ref, cpack_ref, qpack_ref, p1w_ref, spack_ref, out_ref):
        f32 = jnp.float32
        x_v = x_ref[...]                                       # (bbch, T)

        # ---- im2col for block1: KT rolled copies, host {0,1} boundary masks
        cols = []
        for k in range(KT):
            sh = (PAD1_L - k) % T
            rolled = x_v if sh == 0 else pltpu.roll(x_v, sh, axis=1)
            cols.append(rolled * qpack_ref[k:k + 1, km_off:km_off + T])
        xim = jnp.concatenate(cols, axis=0)                    # (KT*bbch, T)

        # ---- fused conv1 + BN1 + spatial conv2 + BN2: one MXU matmul + ELU
        h2 = jnp.dot(cpack_ref[:, w12_off:w12_off + KT * bbch], xim,
                     preferred_element_type=f32)
        h2 = _elu(h2 + cpack_ref[:, b12_off:b12_off + T])      # (R, T)

        # ---- AvgPool1 (output columns pre-shifted by PAD3_L, rest exactly 0)
        h2pw = jnp.dot(h2, p1w_ref[...], preferred_element_type=f32)   # (R, T)

        # ---- block3 depthwise conv on the MXU: stack K3 rolled copies on
        #      sublanes and contract against the banded weight
        taps = [h2pw] + [pltpu.roll(h2pw, (T - j) % T, axis=1)
                         for j in range(1, K3)]
        stack = jnp.concatenate(taps, axis=0)                  # (K3*R, T)
        acc3 = jnp.dot(cpack_ref[:, w3_off:w3_off + K3 * R], stack,
                       preferred_element_type=f32)[:, :T1]     # (R, T1)

        # ---- pointwise 1x1 conv (BN3 folded) + pre-broadcast bias + ELU
        h3 = _elu(jnp.dot(cpack_ref[:, w4_off:w4_off + R], acc3,
                          preferred_element_type=f32)
                  + cpack_ref[:, b3_off:b3_off + T1])          # (R, T1)

        # ---- AvgPool2 + flatten-expand folded (p2rep), classifier tail
        m = jnp.dot(h3, qpack_ref[:, p2rep_off:p2rep_off + T2 * CLASSES],
                    preferred_element_type=f32)                # (R, T2*CLS)
        m = m * cpack_ref[:, wfc_off:wfc_off + T2 * CLASSES]
        sm = jnp.dot(spack_ref[:, sbt_off:sbt_off + R], m,
                     preferred_element_type=f32)               # (bb, T2*CLS)
        logits = (jnp.dot(sm, qpack_ref[:, gmat_off:gmat_off + CLASSES],
                          preferred_element_type=f32)
                  + spack_ref[:, bfc_off:bfc_off + CLASSES])   # (bb, CLS)
        out_ref[...] = logits.astype(out_ref.dtype)            # single store

    x_r = x[:, 0].reshape(n * CHANS, T)
    const_ops = [consts['cpack'], consts['qpack'], consts['p1w'], consts['spack']]

    grid_spec = pltpu.PrefetchScalarGridSpec(
        num_scalar_prefetch=0,
        grid=(n // bb,),
        in_specs=[pl.BlockSpec((bbch, T), lambda i: (i, 0))]
                 + [pl.BlockSpec(a.shape, lambda i: (0, 0)) for a in const_ops],
        out_specs=pl.BlockSpec((bb, CLASSES), lambda i: (i, 0)),
    )

    out = pl.pallas_call(
        kernel,
        out_shape=jax.ShapeDtypeStruct((n, CLASSES), jnp.float32),
        grid_spec=grid_spec,
        compiler_params=pltpu.CompilerParams(dimension_semantics=("arbitrary",)),
    )(x_r, *const_ops)
    return out


# ---------------------------------------------------------------------------
# Deterministic parameter initialization (matches the PyTorch module's shapes,
# including the max-norm renormalization applied in __init__).
# ---------------------------------------------------------------------------
def renorm_rows(w, maxnorm):
    """torch.renorm(w, p=2, dim=0, maxnorm)."""
    flat = w.reshape(w.shape[0], -1)
    nrm = jnp.sqrt(jnp.sum(flat * flat, axis=1, keepdims=True))
    scale = jnp.where(nrm > maxnorm, maxnorm / (nrm + 1e-7), 1.0)
    return (flat * scale).reshape(w.shape)


def make_params(key):
    ks = jax.random.split(key, 18)
    f32 = jnp.float32

    def bn(kg, kb, km, kv, c):
        gamma = 1.0 + 0.1 * jax.random.normal(kg, (c,), f32)
        beta = 0.1 * jax.random.normal(kb, (c,), f32)
        rmean = 0.1 * jax.random.normal(km, (c,), f32)
        rvar = 0.5 + jax.random.uniform(kv, (c,), f32)
        scale = gamma / jnp.sqrt(rvar + BN_EPS)
        bias = beta - rmean * scale
        return scale, bias

    w1 = 0.3 * jax.random.normal(ks[0], (F1, KT), f32)              # Conv2d(1,F1,(1,KT))
    s1, b1 = bn(ks[1], ks[2], ks[3], ks[4], F1)

    w2 = 0.3 * jax.random.normal(ks[5], (DFL, CHANS), f32)          # Conv2d(F1,DFL,(CHANS,1),groups=F1)
    w2 = renorm_rows(w2, 1.0)                                       # max_norm1
    s2, b2 = bn(ks[6], ks[7], ks[8], ks[9], DFL)

    w3 = 0.3 * jax.random.normal(ks[10], (F2, K3), f32)             # depthwise (1,K3)
    w4 = 0.3 * jax.random.normal(ks[11], (F2, F2), f32)             # pointwise 1x1
    s3, b3 = bn(ks[12], ks[13], ks[14], ks[15], F2)

    wfc = 0.3 * jax.random.normal(ks[16], (CLASSES, LINEAR), f32)
    wfc = renorm_rows(wfc, 0.25)                                    # max_norm2
    bfc = 0.1 * jax.random.normal(ks[17], (CLASSES,), f32)

    return dict(w1=w1, s1=s1, b1=b1, w2=w2, s2=s2, b2=b2,
                w3=w3, w4=w4, s3=s3, b3=b3, wfc=wfc, bfc=bfc)


# ---------------------------------------------------------------------------
# Pure-JAX reference (lax.conv), mirroring PyTorch NCHW semantics.
# ---------------------------------------------------------------------------
def eegnet_forward_ref(x, p):
    dn = ('NCHW', 'OIHW', 'NCHW')
    hp = lax.Precision.HIGHEST

    h = lax.conv_general_dilated(x, p['w1'].reshape(F1, 1, 1, KT), (1, 1),
                                 [(0, 0), (PAD1_L, PAD1_R)], dimension_numbers=dn,
                                 precision=hp)
    h = h * p['s1'][None, :, None, None] + p['b1'][None, :, None, None]

    h = lax.conv_general_dilated(h, p['w2'].reshape(DFL, 1, CHANS, 1), (1, 1),
                                 [(0, 0), (0, 0)], dimension_numbers=dn,
                                 feature_group_count=F1, precision=hp)
    h = h * p['s2'][None, :, None, None] + p['b2'][None, :, None, None]
    h = jnp.where(h > 0, h, jnp.exp(h) - 1.0)
    h = h.reshape(h.shape[0], DFL, 1, T1, PK1).mean(-1)

    h = lax.conv_general_dilated(h, p['w3'].reshape(F2, 1, 1, K3), (1, 1),
                                 [(0, 0), (PAD3_L, PAD3_R)], dimension_numbers=dn,
                                 feature_group_count=F2, precision=hp)
    h = lax.conv_general_dilated(h, p['w4'].reshape(F2, F2, 1, 1), (1, 1),
                                 [(0, 0), (0, 0)], dimension_numbers=dn, precision=hp)
    h = h * p['s3'][None, :, None, None] + p['b3'][None, :, None, None]
    h = jnp.where(h > 0, h, jnp.exp(h) - 1.0)
    h = h.reshape(h.shape[0], F2, 1, T2, PK2).mean(-1)

    flat = h.reshape(h.shape[0], -1)                                # (N, LINEAR)
    return flat @ p['wfc'].T + p['bfc'][None, :]


# ---------------------------------------------------------------------------
if __name__ == "__main__":
    key = jax.random.PRNGKey(0)
    kx, kp = jax.random.split(key)
    x = jax.random.normal(kx, (N, 1, CHANS, T), jnp.float32)
    params = make_params(kp)

    out = jax.block_until_ready(eegnet_forward_pallas(x, params))
    ref = jax.block_until_ready(eegnet_forward_ref(x, params))
    np.testing.assert_allclose(np.asarray(out), np.asarray(ref), rtol=5e-3, atol=5e-3)

    print("KERNEL_OK")
</pallas_src>

<mosaic_0001>
module attributes {stable_mosaic.version = 11 : i64} {
  func.func @kernel(%arg0: i32, %arg1: memref<16x128xf32, #tpu.memory_space<vmem>>, %arg2: memref<32x1152xf32, #tpu.memory_space<vmem>>, %arg3: memref<32x384xf32, #tpu.memory_space<vmem>>, %arg4: memref<128x128xf32, #tpu.memory_space<vmem>>, %arg5: memref<2x256xf32, #tpu.memory_space<vmem>>, %arg6: memref<2x4xf32, #tpu.memory_space<vmem>>) attributes {dimension_semantics = [#tpu.dimension_semantics<arbitrary>], iteration_bounds = array<i64: 1>, scalar_prefetch = 0 : i64, scratch_operands = 0 : i64, tpu.core_type = #tpu.core_type<tc>, window_params = [{transform_indices = @transform_0, window_bounds = array<i64: 16, 128>}, {pipeline_mode = #tpu.pipeline_mode<synchronous>, transform_indices = @transform_1, window_bounds = array<i64: 32, 1152>}, {pipeline_mode = #tpu.pipeline_mode<synchronous>, transform_indices = @transform_2, window_bounds = array<i64: 32, 384>}, {pipeline_mode = #tpu.pipeline_mode<synchronous>, transform_indices = @transform_3, window_bounds = array<i64: 128, 128>}, {pipeline_mode = #tpu.pipeline_mode<synchronous>, transform_indices = @transform_4, window_bounds = array<i64: 2, 256>}, {transform_indices = @transform_5, window_bounds = array<i64: 2, 4>}]} {
    %c0 = arith.constant 0 : index
    %c0_0 = arith.constant 0 : index
    %0 = vector.load %arg1[%c0, %c0_0] : memref<16x128xf32, #tpu.memory_space<vmem>>, vector<16x128xf32>
    %c3_i32 = arith.constant 3 : i32
    %1 = tpu.dynamic_rotate %0 by %c3_i32 dim 1 : vector<16x128xf32>, i32 -> vector<16x128xf32>
    %c0_1 = arith.constant 0 : index
    %c256 = arith.constant 256 : index
    %2 = vector.load %arg3[%c0_1, %c256] : memref<32x384xf32, #tpu.memory_space<vmem>>, vector<1x128xf32>
    %3 = vector.broadcast %2 : vector<1x128xf32> to vector<16x128xf32>
    %4 = arith.mulf %1, %3 : vector<16x128xf32>
    %c2_i32 = arith.constant 2 : i32
    %5 = tpu.dynamic_rotate %0 by %c2_i32 dim 1 : vector<16x128xf32>, i32 -> vector<16x128xf32>
    %c1 = arith.constant 1 : index
    %c256_2 = arith.constant 256 : index
    %6 = vector.load %arg3[%c1, %c256_2] : memref<32x384xf32, #tpu.memory_space<vmem>>, vector<1x128xf32>
    %7 = vector.broadcast %6 : vector<1x128xf32> to vector<16x128xf32>
    %8 = arith.mulf %5, %7 : vector<16x128xf32>
    %c1_i32 = arith.constant 1 : i32
    %9 = tpu.dynamic_rotate %0 by %c1_i32 dim 1 : vector<16x128xf32>, i32 -> vector<16x128xf32>
    %c2 = arith.constant 2 : index
    %c256_3 = arith.constant 256 : index
    %10 = vector.load %arg3[%c2, %c256_3] : memref<32x384xf32, #tpu.memory_space<vmem>>, vector<1x128xf32>
    %11 = vector.broadcast %10 : vector<1x128xf32> to vector<16x128xf32>
    %12 = arith.mulf %9, %11 : vector<16x128xf32>
    %c3 = arith.constant 3 : index
    %c256_4 = arith.constant 256 : index
    %13 = vector.load %arg3[%c3, %c256_4] : memref<32x384xf32, #tpu.memory_space<vmem>>, vector<1x128xf32>
    %14 = vector.broadcast %13 : vector<1x128xf32> to vector<16x128xf32>
    %15 = arith.mulf %0, %14 : vector<16x128xf32>
    %c127_i32 = arith.constant 127 : i32
    %16 = tpu.dynamic_rotate %0 by %c127_i32 dim 1 : vector<16x128xf32>, i32 -> vector<16x128xf32>
    %c4 = arith.constant 4 : index
    %c256_5 = arith.constant 256 : index
    %17 = vector.load %arg3[%c4, %c256_5] : memref<32x384xf32, #tpu.memory_space<vmem>>, vector<1x128xf32>
    %18 = vector.broadcast %17 : vector<1x128xf32> to vector<16x128xf32>
    %19 = arith.mulf %16, %18 : vector<16x128xf32>
    %c126_i32 = arith.constant 126 : i32
    %20 = tpu.dynamic_rotate %0 by %c126_i32 dim 1 : vector<16x128xf32>, i32 -> vector<16x128xf32>
    %c5 = arith.constant 5 : index
    %c256_6 = arith.constant 256 : index
    %21 = vector.load %arg3[%c5, %c256_6] : memref<32x384xf32, #tpu.memory_space<vmem>>, vector<1x128xf32>
    %22 = vector.broadcast %21 : vector<1x128xf32> to vector<16x128xf32>
    %23 = arith.mulf %20, %22 : vector<16x128xf32>
    %c125_i32 = arith.constant 125 : i32
    %24 = tpu.dynamic_rotate %0 by %c125_i32 dim 1 : vector<16x128xf32>, i32 -> vector<16x128xf32>
    %c6 = arith.constant 6 : index
    %c256_7 = arith.constant 256 : index
    %25 = vector.load %arg3[%c6, %c256_7] : memref<32x384xf32, #tpu.memory_space<vmem>>, vector<1x128xf32>
    %26 = vector.broadcast %25 : vector<1x128xf32> to vector<16x128xf32>
    %27 = arith.mulf %24, %26 : vector<16x128xf32>
    %c124_i32 = arith.constant 124 : i32
    %28 = tpu.dynamic_rotate %0 by %c124_i32 dim 1 : vector<16x128xf32>, i32 -> vector<16x128xf32>
    %c7 = arith.constant 7 : index
    %c256_8 = arith.constant 256 : index
    %29 = vector.load %arg3[%c7, %c256_8] : memref<32x384xf32, #tpu.memory_space<vmem>>, vector<1x128xf32>
    %30 = vector.broadcast %29 : vector<1x128xf32> to vector<16x128xf32>
    %31 = arith.mulf %28, %30 : vector<16x128xf32>
    %32 = tpu.concatenate %4, %8, %12, %15, %19, %23, %27, %31 in 0 : vector<16x128xf32>, vector<16x128xf32>, vector<16x128xf32>, vector<16x128xf32>, vector<16x128xf32>, vector<16x128xf32>, vector<16x128xf32>, vector<16x128xf32> -> vector<128x128xf32>
    %c0_9 = arith.constant 0 : index
    %c0_10 = arith.constant 0 : index
    %33 = vector.load %arg2[%c0_9, %c0_10] : memref<32x1152xf32, #tpu.memory_space<vmem>>, vector<32x128xf32>
    %cst = arith.constant dense<0.000000e+00> : vector<32x128xf32>
    %34 = tpu.matmul %33, %32, %cst {dimension_numbers = #tpu.dot_dimension_numbers<[1], [0], [0], [1], [0, 0, 1, 1], [], []>} : vector<32x128xf32>, vector<128x128xf32>, vector<32x128xf32> -> vector<32x128xf32>
    %c0_11 = arith.constant 0 : index
    %c128 = arith.constant 128 : index
    %35 = vector.load %arg2[%c0_11, %c128] : memref<32x1152xf32, #tpu.memory_space<vmem>>, vector<32x128xf32>
    %36 = arith.addf %34, %35 : vector<32x128xf32>
    %cst_12 = arith.constant 0.000000e+00 : f32
    %37 = vector.broadcast %cst_12 : f32 to vector<32x128xf32>
    %38 = arith.cmpf ogt, %36, %37 : vector<32x128xf32>
    %cst_13 = arith.constant 0.000000e+00 : f32
    %39 = vector.broadcast %cst_13 : f32 to vector<32x128xf32>
    %40 = arith.minimumf %36, %39 : vector<32x128xf32>
    %41 = math.exp %40 : vector<32x128xf32>
    %cst_14 = arith.constant 1.000000e+00 : f32
    %42 = vector.broadcast %cst_14 : f32 to vector<32x128xf32>
    %43 = arith.subf %41, %42 : vector<32x128xf32>
    %44 = arith.select %38, %36, %43 : vector<32x128xi1>, vector<32x128xf32>
    %c0_15 = arith.constant 0 : index
    %c0_16 = arith.constant 0 : index
    %45 = vector.load %arg4[%c0_15, %c0_16] : memref<128x128xf32, #tpu.memory_space<vmem>>, vector<128x128xf32>
    %cst_17 = arith.constant dense<0.000000e+00> : vector<32x128xf32>
    %46 = tpu.matmul %44, %45, %cst_17 {dimension_numbers = #tpu.dot_dimension_numbers<[1], [0], [0], [1], [0, 0, 1, 1], [], []>} : vector<32x128xf32>, vector<128x128xf32>, vector<32x128xf32> -> vector<32x128xf32>
    %c127_i32_18 = arith.constant 127 : i32
    %47 = tpu.dynamic_rotate %46 by %c127_i32_18 dim 1 : vector<32x128xf32>, i32 -> vector<32x128xf32>
    %c126_i32_19 = arith.constant 126 : i32
    %48 = tpu.dynamic_rotate %46 by %c126_i32_19 dim 1 : vector<32x128xf32>, i32 -> vector<32x128xf32>
    %c125_i32_20 = arith.constant 125 : i32
    %49 = tpu.dynamic_rotate %46 by %c125_i32_20 dim 1 : vector<32x128xf32>, i32 -> vector<32x128xf32>
    %c124_i32_21 = arith.constant 124 : i32
    %50 = tpu.dynamic_rotate %46 by %c124_i32_21 dim 1 : vector<32x128xf32>, i32 -> vector<32x128xf32>
    %c123_i32 = arith.constant 123 : i32
    %51 = tpu.dynamic_rotate %46 by %c123_i32 dim 1 : vector<32x128xf32>, i32 -> vector<32x128xf32>
    %c122_i32 = arith.constant 122 : i32
    %52 = tpu.dynamic_rotate %46 by %c122_i32 dim 1 : vector<32x128xf32>, i32 -> vector<32x128xf32>
    %c121_i32 = arith.constant 121 : i32
    %53 = tpu.dynamic_rotate %46 by %c121_i32 dim 1 : vector<32x128xf32>, i32 -> vector<32x128xf32>
    %c120_i32 = arith.constant 120 : i32
    %54 = tpu.dynamic_rotate %46 by %c120_i32 dim 1 : vector<32x128xf32>, i32 -> vector<32x128xf32>
    %c119_i32 = arith.constant 119 : i32
    %55 = tpu.dynamic_rotate %46 by %c119_i32 dim 1 : vector<32x128xf32>, i32 -> vector<32x128xf32>
    %c118_i32 = arith.constant 118 : i32
    %56 = tpu.dynamic_rotate %46 by %c118_i32 dim 1 : vector<32x128xf32>, i32 -> vector<32x128xf32>
    %c117_i32 = arith.constant 117 : i32
    %57 = tpu.dynamic_rotate %46 by %c117_i32 dim 1 : vector<32x128xf32>, i32 -> vector<32x128xf32>
    %c116_i32 = arith.constant 116 : i32
    %58 = tpu.dynamic_rotate %46 by %c116_i32 dim 1 : vector<32x128xf32>, i32 -> vector<32x128xf32>
    %c115_i32 = arith.constant 115 : i32
    %59 = tpu.dynamic_rotate %46 by %c115_i32 dim 1 : vector<32x128xf32>, i32 -> vector<32x128xf32>
    %c114_i32 = arith.constant 114 : i32
    %60 = tpu.dynamic_rotate %46 by %c114_i32 dim 1 : vector<32x128xf32>, i32 -> vector<32x128xf32>
    %c113_i32 = arith.constant 113 : i32
    %61 = tpu.dynamic_rotate %46 by %c113_i32 dim 1 : vector<32x128xf32>, i32 -> vector<32x128xf32>
    %62 = tpu.concatenate %46, %47, %48, %49, %50, %51, %52, %53, %54, %55, %56, %57, %58, %59, %60, %61 in 0 : vector<32x128xf32>, vector<32x128xf32>, vector<32x128xf32>, vector<32x128xf32>, vector<32x128xf32>, vector<32x128xf32>, vector<32x128xf32>, vector<32x128xf32>, vector<32x128xf32>, vector<32x128xf32>, vector<32x128xf32>, vector<32x128xf32>, vector<32x128xf32>, vector<32x128xf32>, vector<32x128xf32>, vector<32x128xf32> -> vector<512x128xf32>
    %c0_22 = arith.constant 0 : index
    %c256_23 = arith.constant 256 : index
    %63 = vector.load %arg2[%c0_22, %c256_23] : memref<32x1152xf32, #tpu.memory_space<vmem>>, vector<32x512xf32>
    %cst_24 = arith.constant dense<0.000000e+00> : vector<32x128xf32>
    %64 = tpu.matmul %63, %62, %cst_24 {dimension_numbers = #tpu.dot_dimension_numbers<[1], [0], [0], [1], [0, 0, 1, 1], [], []>} : vector<32x512xf32>, vector<512x128xf32>, vector<32x128xf32> -> vector<32x128xf32>
    %65 = vector.extract_strided_slice %64 {offsets = [0, 0], sizes = [32, 32], strides = [1, 1]} : vector<32x128xf32> to vector<32x32xf32>
    %c0_25 = arith.constant 0 : index
    %c768 = arith.constant 768 : index
    %66 = vector.load %arg2[%c0_25, %c768] : memref<32x1152xf32, #tpu.memory_space<vmem>>, vector<32x32xf32>
    %cst_26 = arith.constant dense<0.000000e+00> : vector<32x32xf32>
    %67 = tpu.matmul %66, %65, %cst_26 {dimension_numbers = #tpu.dot_dimension_numbers<[1], [0], [0], [1], [0, 0, 1, 1], [], []>} : vector<32x32xf32>, vector<32x32xf32>, vector<32x32xf32> -> vector<32x32xf32>
    %c0_27 = arith.constant 0 : index
    %c896 = arith.constant 896 : index
    %68 = vector.load %arg2[%c0_27, %c896] : memref<32x1152xf32, #tpu.memory_space<vmem>>, vector<32x32xf32>
    %69 = arith.addf %67, %68 : vector<32x32xf32>
    %cst_28 = arith.constant 0.000000e+00 : f32
    %70 = vector.broadcast %cst_28 : f32 to vector<32x32xf32>
    %71 = arith.cmpf ogt, %69, %70 : vector<32x32xf32>
    %cst_29 = arith.constant 0.000000e+00 : f32
    %72 = vector.broadcast %cst_29 : f32 to vector<32x32xf32>
    %73 = arith.minimumf %69, %72 : vector<32x32xf32>
    %74 = math.exp %73 : vector<32x32xf32>
    %cst_30 = arith.constant 1.000000e+00 : f32
    %75 = vector.broadcast %cst_30 : f32 to vector<32x32xf32>
    %76 = arith.subf %74, %75 : vector<32x32xf32>
    %77 = arith.select %71, %69, %76 : vector<32x32xi1>, vector<32x32xf32>
    %c0_31 = arith.constant 0 : index
    %c0_32 = arith.constant 0 : index
    %78 = vector.load %arg3[%c0_31, %c0_32] : memref<32x384xf32, #tpu.memory_space<vmem>>, vector<32x32xf32>
    %cst_33 = arith.constant dense<0.000000e+00> : vector<32x32xf32>
    %79 = tpu.matmul %77, %78, %cst_33 {dimension_numbers = #tpu.dot_dimension_numbers<[1], [0], [0], [1], [0, 0, 1, 1], [], []>} : vector<32x32xf32>, vector<32x32xf32>, vector<32x32xf32> -> vector<32x32xf32>
    %c0_34 = arith.constant 0 : index
    %c1024 = arith.constant 1024 : index
    %80 = vector.load %arg2[%c0_34, %c1024] : memref<32x1152xf32, #tpu.memory_space<vmem>>, vector<32x32xf32>
    %81 = arith.mulf %79, %80 : vector<32x32xf32>
    %c0_35 = arith.constant 0 : index
    %c0_36 = arith.constant 0 : index
    %82 = vector.load %arg5[%c0_35, %c0_36] : memref<2x256xf32, #tpu.memory_space<vmem>>, vector<2x32xf32>
    %cst_37 = arith.constant dense<0.000000e+00> : vector<2x32xf32>
    %83 = tpu.matmul %82, %81, %cst_37 {dimension_numbers = #tpu.dot_dimension_numbers<[1], [0], [0], [1], [0, 0, 1, 1], [], []>} : vector<2x32xf32>, vector<32x32xf32>, vector<2x32xf32> -> vector<2x32xf32>
    %c0_38 = arith.constant 0 : index
    %c128_39 = arith.constant 128 : index
    %84 = vector.load %arg3[%c0_38, %c128_39] : memref<32x384xf32, #tpu.memory_space<vmem>>, vector<32x4xf32>
    %cst_40 = arith.constant dense<0.000000e+00> : vector<2x4xf32>
    %85 = tpu.matmul %83, %84, %cst_40 {dimension_numbers = #tpu.dot_dimension_numbers<[1], [0], [0], [1], [0, 0, 1, 1], [], []>} : vector<2x32xf32>, vector<32x4xf32>, vector<2x4xf32> -> vector<2x4xf32>
    %c0_41 = arith.constant 0 : index
    %c128_42 = arith.constant 128 : index
    %86 = vector.load %arg5[%c0_41, %c128_42] : memref<2x256xf32, #tpu.memory_space<vmem>>, vector<2x4xf32>
    %87 = arith.addf %85, %86 : vector<2x4xf32>
    %c0_43 = arith.constant 0 : index
    %c0_44 = arith.constant 0 : index
    %88 = vector.load %arg6[%c0_43, %c0_44] : memref<2x4xf32, #tpu.memory_space<vmem>>, vector<2x4xf32>
    tpu.vector_store %arg6[%c0_43, %c0_44], %87 {strides = array<i32>} : memref<2x4xf32, #tpu.memory_space<vmem>>, vector<2x4xf32>,
    return
  }
  func.func @transform_0(%arg0: i32) -> (i32, i32) {
    %c0_i32 = arith.constant 0 : i32
    %c0_i32_0 = arith.constant 0 : i32
    return %arg0, %c0_i32 : i32, i32
  }
  func.func @transform_1(%arg0: i32) -> (i32, i32) {
    %c0_i32 = arith.constant 0 : i32
    %c0_i32_0 = arith.constant 0 : i32
    %c0_i32_1 = arith.constant 0 : i32
    return %c0_i32, %c0_i32_0 : i32, i32
  }
  func.func @transform_2(%arg0: i32) -> (i32, i32) {
    %c0_i32 = arith.constant 0 : i32
    %c0_i32_0 = arith.constant 0 : i32
    %c0_i32_1 = arith.constant 0 : i32
    return %c0_i32, %c0_i32_0 : i32, i32
  }
  func.func @transform_3(%arg0: i32) -> (i32, i32) {
    %c0_i32 = arith.constant 0 : i32
    %c0_i32_0 = arith.constant 0 : i32
    %c0_i32_1 = arith.constant 0 : i32
    return %c0_i32, %c0_i32_0 : i32, i32
  }
  func.func @transform_4(%arg0: i32) -> (i32, i32) {
    %c0_i32 = arith.constant 0 : i32
    %c0_i32_0 = arith.constant 0 : i32
    %c0_i32_1 = arith.constant 0 : i32
    return %c0_i32, %c0_i32_0 : i32, i32
  }
  func.func @transform_5(%arg0: i32) -> (i32, i32) {
    %c0_i32 = arith.constant 0 : i32
    %c0_i32_0 = arith.constant 0 : i32
    return %arg0, %c0_i32 : i32, i32
  }
}

</mosaic_0001>

<bundles_post_ra>
// kernel: tpu_custom_call.1
= control target key start
LH: loop header
LB: loop body
LE: loop exit
PB: predicated region body
PF: predicated region fallthrough
CT: control target
= control target key end

     0   :  { %10 = vsyncpa [#allocation3], 0  ;;  %s2049_s0 = inlined_call_operand.hbm [shape: f32[16,128], index: 0, kind: input, shape index: {}]   ;;  %s2050_s1 = inlined_call_operand.hbm [shape: f32[32,1152], index: 1, kind: input, shape index: {}]   ;;  %s2051_s2 = inlined_call_operand.hbm [shape: f32[32,384], index: 2, kind: input, shape index: {}]   ;;  %s2052_s3 = inlined_call_operand.hbm [shape: f32[128,128], index: 3, kind: input, shape index: {}]   ;;  %s2053_s4 = inlined_call_operand.vmem [shape: f32[2,256], index: 4, kind: input, shape index: {}]   ;;  %s2054_s5 = inlined_call_operand.hbm [shape: f32[2,4], index: 5, kind: output, shape index: {}]  }
   0x1   :  { %11 = vsyncpa [#allocation6], 0 }
   0x2   :  { %12 = vsyncpa [#allocation9], 0 }
   0x3   :  { %13 = vsyncpa [#allocation4], 0  ;;  %s1834_s18 = smov [#allocation5]   ;;  %s1716_s22 = scalar_lea.hbm %s2050_s1, 4608 }
   0x4   :  { %s31_s19 = sshll.u32 %s1834_s18, 4  ;;  %p1717_p0 = scmp.ne.s32.totalorder %s2050_s1, %s1716_s22  ;;  %s32_s19 = int_to_ptr.vmem [resolvable:$true] %s31_s19 }
   0x5   :  { %p1720_p1 = scmp.lt.u32.totalorder %s1716_s22, %s2050_s1 }
   0x7   :  { %p1722_p2 = pnand %p1720_p1, %p1717_p0 }
   0x9   :  { %1725 = shalt.err (!%p1722_p2)
}
   0xa   :  { %s1726_s27 = scalar_lea.vmem %s32_s19, 4608  ;;  %p1731_p4 = scmp.lt.s32.totalorder %s32_s19, %s32_s19 }
   0xb   :  { %p1727_p3 = scmp.ne.s32.totalorder %s32_s19, %s1726_s27  ;;  %p1732_p5 = scmp.lt.s32.totalorder %s1726_s27, %s1726_s27 }
   0xd   :  { %p1733_p6 = por %p1732_p5, %p1731_p4 }
   0xf   :  { %p1734_p7 = pnand %p1733_p6, %p1727_p3 }
  0x11   :  { %1737 = shalt.err (!%p1734_p7)
}
  0x12   :  { %s1835_s28 = smov 1152   ;;  %s1836_s29 = smov 72  }
  0x13   :  { %37 = dma.hbm_to_vmem [thread:$0]  %s2050_s1, 4608, %s32_s19, [#allocation6], %s1835_s28, %s1835_s28, %s1836_s29  }
  0x14   :  { %s1837_s7 = smov [#allocation2]   ;;  %s1738_s11 = scalar_lea.hbm %s2049_s0, 256 }
  0x15   :  { %s19_s8 = sshll.u32 %s1837_s7, 4  ;;  %p1739_p8 = scmp.ne.s32.totalorder %s2049_s0, %s1738_s11  ;;  %s20_s8 = int_to_ptr.vmem [resolvable:$true] %s19_s8 }
  0x16   :  { %p1742_p9 = scmp.lt.u32.totalorder %s1738_s11, %s2049_s0 }
  0x18   :  { %p1744_p10 = pnand %p1742_p9, %p1739_p8 }
  0x1a   :  { %1747 = shalt.err (!%p1744_p10)
}
  0x1b   :  { %s1748_s16 = scalar_lea.vmem %s20_s8, 256  ;;  %p1753_p12 = scmp.lt.s32.totalorder %s20_s8, %s20_s8 }
  0x1c   :  { %p1749_p11 = scmp.ne.s32.totalorder %s20_s8, %s1748_s16  ;;  %p1754_p13 = scmp.lt.s32.totalorder %s1748_s16, %s1748_s16 }
  0x1e   :  { %p1755_p0 = por %p1754_p13, %p1753_p12 }
  0x20   :  { %p1756_p1 = pnand %p1755_p0, %p1749_p11 }
  0x22   :  { %1759 = shalt.err (!%p1756_p1)
}
  0x23   :  { %s1838_s1 = smov 128   ;;  %s1839_s17 = smov 8  }
  0x24   :  { %25 = dma.hbm_to_vmem [thread:$0]  %s2049_s0, 256, %s20_s8, [#allocation3], %s1838_s1, %s1838_s1, %s1839_s17  }
  0x25   :  { %s1840_s20 = smov [#allocation7]   ;;  %s1760_s24 = scalar_lea.hbm %s2051_s2, 1536 }
  0x26   :  { %s43_s21 = sshll.u32 %s1840_s20, 4  ;;  %p1761_p2 = scmp.ne.s32.totalorder %s2051_s2, %s1760_s24  ;;  %s44_s21 = int_to_ptr.vmem [resolvable:$true] %s43_s21 }
  0x27   :  { %p1764_p3 = scmp.lt.u32.totalorder %s1760_s24, %s2051_s2 }
  0x29   :  { %p1766_p4 = pnand %p1764_p3, %p1761_p2 }
  0x2b   :  { %1769 = shalt.err (!%p1766_p4)
}
  0x2c   :  { %s1770_s29 = scalar_lea.vmem %s44_s21, 1536  ;;  %p1775_p6 = scmp.lt.s32.totalorder %s44_s21, %s44_s21 }
  0x2d   :  { %p1771_p5 = scmp.ne.s32.totalorder %s44_s21, %s1770_s29  ;;  %p1776_p7 = scmp.lt.s32.totalorder %s1770_s29, %s1770_s29 }
  0x2f   :  { %p1777_p8 = por %p1776_p7, %p1775_p6 }
  0x31   :  { %p1778_p9 = pnand %p1777_p8, %p1771_p5 }
  0x33   :  { %1781 = shalt.err (!%p1778_p9)
}
  0x34   :  { %s1841_s0 = smov 384   ;;  %s1842_s30 = smov 24  }
  0x35   :  { %49 = dma.hbm_to_vmem [thread:$0]  %s2051_s2, 1536, %s44_s21, [#allocation6], %s1841_s0, %s1841_s0, %s1842_s30  }
  0x36   :  { %s1843_s8 = smov [#allocation8]   ;;  %s1782_s12 = scalar_lea.hbm %s2052_s3, 2048 }
  0x37   :  { %s55_s9 = sshll.u32 %s1843_s8, 4  ;;  %p1783_p10 = scmp.ne.s32.totalorder %s2052_s3, %s1782_s12  ;;  %s56_s9 = int_to_ptr.vmem [resolvable:$true] %s55_s9 }
  0x38   :  { %p1786_p11 = scmp.lt.u32.totalorder %s1782_s12, %s2052_s3 }
  0x3a   :  { %p1788_p12 = pnand %p1786_p11, %p1783_p10 }
  0x3c   :  { %1791 = shalt.err (!%p1788_p12)
}
  0x3d   :  { %s1792_s18 = scalar_lea.vmem %s56_s9, 2048  ;;  %p1797_p0 = scmp.lt.s32.totalorder %s56_s9, %s56_s9 }
  0x3e   :  { %p1793_p13 = scmp.ne.s32.totalorder %s56_s9, %s1792_s18  ;;  %p1798_p1 = scmp.lt.s32.totalorder %s1792_s18, %s1792_s18 }
  0x40   :  { %p1799_p2 = por %p1798_p1, %p1797_p0 }
  0x42   :  { %p1800_p3 = pnand %p1799_p2, %p1793_p13 }
  0x44   :  { %1803 = shalt.err (!%p1800_p3)
}
  0x45   :  { %61 = dma.hbm_to_vmem [thread:$0]  %s2052_s3, 2048, %s56_s9, [#allocation9], %s1838_s1, %s1838_s1, %s1839_s17  }
  0x46   :  { %1826 = dma.done.wait [#allocation3], 256  }
  0x47   :  { %1827 = vsyncadd [#allocation3], 4294967040 }
  0x48   :  { %1828 = dma.done.wait [#allocation6], 6144  }
  0x49   :  { %1829 = vsyncadd [#allocation6], 4294961152 }
  0x4a   :  { %1830 = dma.done.wait [#allocation9], 2048  }
  0x4b   :  { %1831 = vsyncadd [#allocation9], 4294965248  ;;  %v76_v0 = vld [vmem:[#allocation2] sm:$0xff]  ;;  %s1844_s20 = smov 2   ;;  %s1845_s21 = smov 3   ;;  %v77_v1 = vld [vmem:[#allocation2 + $0x8] sm:$0xff] }
  0x4c   :  { %85 = vrot.lane.b32.xlu1 %v76_v0, %s1844_s20  ;;  %78 = vrot.lane.b32.xlu0 %v76_v0, %s1845_s21  ;;  %v99_v2 = vld [vmem:[#allocation7 + $0x13] ss:$0 sm:$0xff]  ;;  %s1846_s3 = smov 1   ;;  %s1847_s1 = smov 127   ;;  %v130_v6 = vld [vmem:[#allocation5] sm:$0xff]  ;;  %v248_v8 = vld [vmem:[#allocation8 + $0x8] sm:$0xff] }
  0x4d   :  { %v100_v3 = vmul.f32 %v99_v2, %v76_v0  ;;  %v101_v4 = vmul.f32 %v99_v2, %v77_v1  ;;  %s1848_s17 = smov 126   ;;  %s1849_s22 = smov 125   ;;  %1268 = vmatprep.mubr.f32.mxu0 %v130_v6  ;;  %v247_v7 = vld [vmem:[#allocation8] sm:$0xff]  ;;  %v249_v9 = vld [vmem:[#allocation8 + $0x10] sm:$0xff]  ;;  %v250_v11 = vld [vmem:[#allocation8 + $0x18] sm:$0xff]  ;;  %vm662_vm4 = vcmask 261120  }
  0x4e   :  { %s1850_s23 = smov 124   ;;  %v1394_v10 = vpack.c.bf16 %v248_v8, %v247_v7  ;;  %v1398_v12 = vpack.c.bf16 %v250_v11, %v249_v9  ;;  %v251_v13 = vld [vmem:[#allocation8 + $0x20] sm:$0xff]  ;;  %v252_v14 = vld [vmem:[#allocation8 + $0x28] sm:$0xff]  ;;  %v89_v18 = vld [vmem:[#allocation7 + $0x11] ss:$0 sm:$0xff]  ;;  %s1851_s24 = smov 116  }
  0x4f   :  { %v1950_v5 = vpack.c.bf16 %v101_v4, %v100_v3  ;;  %v1402_v15 = vpack.c.bf16 %v252_v14, %v251_v13  ;;  %v82_v19 = vld [vmem:[#allocation7 + $0x10] ss:$0 sm:$0xff]  ;;  %v96_v26 = vld [vmem:[#allocation7 + $0x12] ss:$0 sm:$0xff]  ;;  %v106_v34 = vld [vmem:[#allocation7 + $0x14] ss:$0 sm:$0xff] }
  0x50   :  { %87 = vrot.lane.b32.xlu1 %v77_v1, %s1844_s20  ;;  %80 = vrot.lane.b32.xlu0 %v77_v1, %s1845_s21  ;;  %v113_v39 = vld [vmem:[#allocation7 + $0x15] ss:$0 sm:$0xff]  ;;  %v120_v45 = vld [vmem:[#allocation7 + $0x16] ss:$0 sm:$0xff]  ;;  %v127_v51 = vld [vmem:[#allocation7 + $0x17] ss:$0 sm:$0xff] }
  0x51   :  { %1395 = vmatprep.subr.bf16.mxu1 %v1394_v10  ;;  %v131_v58 = vld [vmem:[#allocation5 + $0x48] sm:$0xff]  ;;  %v132_v59 = vld [vmem:[#allocation5 + $0x90] sm:$0xff]  ;;  %v133_v60 = vld [vmem:[#allocation5 + $0xd8] sm:$0xff]  ;;  %s1852_s25 = smov 115   ;;  %s1853_s26 = smov 120   ;;  %vm1863_vm9 = vmmov 0  }
  0x52   :  { %1397 = vmatpush3.bf16.msra.mxu1 %v1394_v10  ;;  %v253_v61 = vld [vmem:[#allocation8 + $0x30] sm:$0xff]  ;;  %v254_v62 = vld [vmem:[#allocation8 + $0x38] sm:$0xff]  ;;  %v259_v6 = vld [vmem:[#allocation8 + $0x60] sm:$0xff]  ;;  %s1854_s27 = smov 119   ;;  %s1855_s28 = smov 123   ;;  %vm1045_vm10 = vcmask 25600  }
  0x53   :  { %1399 = vmatprep.subr.bf16.mxu1 %v1398_v12  ;;  %v1406_v63 = vpack.c.bf16 %v254_v62, %v253_v61  ;;  %v257_v3 = vld [vmem:[#allocation8 + $0x50] sm:$0xff]  ;;  %v258_v4 = vld [vmem:[#allocation8 + $0x58] sm:$0xff]  ;;  %v260_v7 = vld [vmem:[#allocation8 + $0x68] sm:$0xff]  ;;  %s1856_s29 = smov 114   ;;  %s1857_s0 = smov 118  }
  0x54   :  { %94 = vrot.lane.b32.xlu1 %v77_v1, %s1846_s3  ;;  %92 = vrot.lane.b32.xlu0 %v76_v0, %s1846_s3  ;;  %v261_v8 = vld [vmem:[#allocation8 + $0x70] sm:$0xff]  ;;  %v1418_v9 = vpack.c.bf16 %v260_v7, %v259_v6  ;;  %v262_v10 = vld [vmem:[#allocation8 + $0x78] sm:$0xff]  ;;  %v134_v13 = vld [vmem:[#allocation5 + $0x8] sm:$0xff]  ;;  %s1858_s30 = smov 122   ;;  %s1859_s6 = smov 113  }
  0x55   :  { %v1422_v11 = vpack.c.bf16 %v262_v10, %v261_v8  ;;  %s1860_s7 = smov 121   ;;  %s1861_s8 = smov 117  }
  0x56   :  { %1401 = vmatpush3.bf16.msra.mxu1 %v1398_v12  ;;  %v135_v12 = vld [vmem:[#allocation5 + $0x50] sm:$0xff]  ;;  %s1865_s13 = smov [#allocation10]  }
  0x57   :  { %1403 = vmatprep.subr.bf16.mxu1 %v1402_v15  ;;  %s1053_s14 = sshll.u32 %s1865_s13, 4  ;;  %s1054_s14 = int_to_ptr.vmem [resolvable:$true] %s1053_s14 }
  0x58   :  { %104 = vrot.lane.b32.xlu1 %v77_v1, %s1847_s1  ;;  %102 = vrot.lane.b32.xlu0 %v76_v0, %s1847_s1  ;;  %s1804_s15 = scalar_lea.vmem %s1054_s14, 32  ;;  %p1809_p5 = scmp.lt.s32.totalorder %s1054_s14, %s1054_s14 }
  0x59   :  { %p1805_p4 = scmp.ne.s32.totalorder %s1054_s14, %s1804_s15  ;;  %p1810_p6 = scmp.lt.s32.totalorder %s1804_s15, %s1804_s15 }
  0x5a   :  { %1405 = vmatpush3.bf16.msra.mxu1 %v1402_v15 }
  0x5b   :  { %1407 = vmatprep.subr.bf16.mxu1 %v1406_v63  ;;  %p1811_p7 = por %p1810_p6, %p1809_p5 }
  0x5c   :  { %111 = vrot.lane.b32.xlu1 %v77_v1, %s1848_s17  ;;  %109 = vrot.lane.b32.xlu0 %v76_v0, %s1848_s17 }
  0x5d   :  { %p1812_p8 = pnand %p1811_p7, %p1805_p4 }
  0x5e   :  { %1409 = vmatpush3.bf16.msra.mxu1 %v1406_v63 }
  0x60   :  { %118 = vrot.lane.b32.xlu1 %v77_v1, %s1849_s22  ;;  %116 = vrot.lane.b32.xlu0 %v76_v0, %s1849_s22 }
  0x64   :  { %125 = vrot.lane.b32.xlu1 %v77_v1, %s1850_s23  ;;  %123 = vrot.lane.b32.xlu0 %v76_v0, %s1850_s23  ;;  %v255_v0 = vld [vmem:[#allocation8 + $0x40] sm:$0xff]  ;;  %v256_v1 = vld [vmem:[#allocation8 + $0x48] sm:$0xff] }
  0x65   :  { %v1410_v2 = vpack.c.bf16 %v256_v1, %v255_v0 }
  0x67   :  { %1411 = vmatprep.subr.bf16.mxu1 %v1410_v2 }
  0x68   :  { %1413 = vmatpush3.bf16.msra.mxu1 %v1410_v2 }
  0xbe   :  { %v86_v16 = vpop.permute.xlu1 %85  ;;  %v79_v17 = vpop.permute.xlu0 %78 }
  0xbf   :  { %v90_v22 = vmul.f32 %v89_v18, %v86_v16  ;;  %v83_v23 = vmul.f32 %v82_v19, %v79_v17 }
  0xc2   :  { %v88_v20 = vpop.permute.xlu1 %87  ;;  %v81_v21 = vpop.permute.xlu0 %80 }
  0xc3   :  { %v91_v24 = vmul.f32 %v89_v18, %v88_v20  ;;  %v84_v25 = vmul.f32 %v82_v19, %v81_v21  ;;  %v137_v18 = vld [vmem:[#allocation5 + $0xe0] sm:$0xff]  ;;  %v136_v20 = vld [vmem:[#allocation5 + $0x98] sm:$0xff] }
  0xc5   :  { %v1362_v27 = vpack.c.bf16 %v84_v25, %v83_v23  ;;  %v1366_v30 = vpack.c.bf16 %v91_v24, %v90_v22 }
  0xc6   :  { %v95_v28 = vpop.permute.xlu1 %94  ;;  %v93_v29 = vpop.permute.xlu0 %92 }
  0xc7   :  { %1363 = vmatprep.subr.bf16.mxu0 %v1362_v27  ;;  %v98_v31 = vmul.f32 %v96_v26, %v95_v28  ;;  %v97_v32 = vmul.f32 %v96_v26, %v93_v29 }
  0xc8   :  { %1365 = vmatpush3.bf16.msra.mxu0 %v1362_v27 }
  0xc9   :  { %1367 = vmatprep.subr.bf16.mxu0 %v1366_v30  ;;  %v1370_v33 = vpack.c.bf16 %v98_v31, %v97_v32 }
  0xca   :  { %v105_v35 = vpop.permute.xlu1 %104  ;;  %v103_v36 = vpop.permute.xlu0 %102 }
  0xcb   :  { %v108_v37 = vmul.f32 %v106_v34, %v105_v35  ;;  %v107_v38 = vmul.f32 %v106_v34, %v103_v36 }
  0xcc   :  { %1369 = vmatpush3.bf16.msra.mxu0 %v1366_v30 }
  0xcd   :  { %1371 = vmatprep.subr.bf16.mxu0 %v1370_v33  ;;  %v1378_v42 = vpack.c.bf16 %v108_v37, %v107_v38 }
  0xce   :  { %v112_v40 = vpop.permute.xlu1 %111  ;;  %v110_v41 = vpop.permute.xlu0 %109 }
  0xcf   :  { %v115_v43 = vmul.f32 %v113_v39, %v112_v40  ;;  %v114_v44 = vmul.f32 %v113_v39, %v110_v41 }
  0xd0   :  { %1373 = vmatpush3.bf16.msra.mxu0 %v1370_v33 }
  0xd1   :  { %1375 = vmatprep.subr.bf16.mxu0 %v1950_v5  ;;  %v1382_v48 = vpack.c.bf16 %v115_v43, %v114_v44 }
  0xd2   :  { %v119_v46 = vpop.permute.xlu1 %118  ;;  %v117_v47 = vpop.permute.xlu0 %116 }
  0xd3   :  { %v122_v49 = vmul.f32 %v120_v45, %v119_v46  ;;  %v121_v50 = vmul.f32 %v120_v45, %v117_v47 }
  0xd4   :  { %1377 = vmatpush3.bf16.msra.mxu0 %v1950_v5  ;;  %v1414_v5 = vpack.c.bf16 %v258_v4, %v257_v3 }
  0xd5   :  { %1379 = vmatprep.subr.bf16.mxu0 %v1378_v42  ;;  %v1386_v54 = vpack.c.bf16 %v122_v49, %v121_v50 }
  0xd6   :  { %v126_v52 = vpop.permute.xlu1 %125  ;;  %v124_v53 = vpop.permute.xlu0 %123  ;;  %1415 = vmatprep.subr.bf16.mxu1 %v1414_v5 }
  0xd7   :  { %v129_v55 = vmul.f32 %v127_v51, %v126_v52  ;;  %v128_v56 = vmul.f32 %v127_v51, %v124_v53  ;;  %1417 = vmatpush3.bf16.msra.mxu1 %v1414_v5  ;;  %v469_v52 = vld [vmem:[#allocation5 + $0x18] sm:$0xff]  ;;  %v471_v53 = vld [vmem:[#allocation5 + $0x28] sm:$0xff] }
  0xd8   :  { %1381 = vmatpush3.bf16.msra.mxu0 %v1378_v42  ;;  %1419 = vmatprep.subr.bf16.mxu1 %v1418_v9 }
  0xd9   :  { %1383 = vmatprep.subr.bf16.mxu0 %v1382_v48  ;;  %v1390_v57 = vpack.c.bf16 %v129_v55, %v128_v56 }
  0xdb   :  { %1421 = vmatpush3.bf16.msra.mxu1 %v1418_v9 }
  0xdc   :  { %1385 = vmatpush3.bf16.msra.mxu0 %v1382_v48  ;;  %1423 = vmatprep.subr.bf16.mxu1 %v1422_v11 }
  0xdd   :  { %1387 = vmatprep.subr.bf16.mxu0 %v1386_v54 }
  0xdf   :  { %1425 = vmatpush3.bf16.msra.mxu1 %v1422_v11 }
  0xe0   :  { %1389 = vmatpush3.bf16.msra.mxu0 %v1386_v54 }
  0xe1   :  { %1391 = vmatprep.subr.bf16.mxu0 %v1390_v57 }
  0xe4   :  { %1393 = vmatpush3.bf16.msra.mxu0 %v1390_v57 }
  0xe7   :  { %1269 = vmatmul.mubr.f32.vlgmr.msra.gmra.mrb[0].mxu0 %v131_v58 }
  0xe8   :  { %1271 = vmatprep.mubr.f32.mxu0 %v132_v59 }
  0xeb   :  { %1272 = vmatmul.mubr.f32.gmra.mrb[2].mxu0 %v133_v60 }
  0xec   :  { %548 = vmatprep.mubr.f32.mxu0 %v469_v52 }
 0x1ba   :  { %v1270_v14 = vpop.f32.mrb[0].mxu0 }
 0x1bb   :  { %v210_v15 = vadd.f32 %v1270_v14, %v135_v12  ;;  %v204_v16 = vpop.f32.mrb[1].mxu0 }
 0x1bc   :  { %v205_v17 = vadd.f32 %v204_v16, %v134_v13 }
 0x1bd   :  { %v228_v19 = vmin.f32 %v210_v15, 0.0  ;;  %vm224_vm1 = vcmp.gt.f32.partialorder %v210_v15, 0.0 }
 0x1be   :  { %v227_v21 = vmin.f32 %v205_v17, 0.0  ;;  %v1273_v22 = vpop.f32.mrb[2].mxu0  ;;  %vm223_vm0 = vcmp.gt.f32.partialorder %v205_v17, 0.0 }
 0x1bf   :  { %v233_v23 = vmul.f32 1.442695, %v228_v19  ;;  %v220_v24 = vadd.f32 %v1273_v22, %v137_v18  ;;  %v214_v25 = vpop.f32.mrb[3].mxu0 }
 0x1c0   :  { %v231_v26 = vmul.f32 1.442695, %v227_v21  ;;  %v215_v27 = vadd.f32 %v214_v25, %v136_v20 }
 0x1c1   :  { %1700 = vpow2.f32 %v233_v23  ;;  %v230_v28 = vmin.f32 %v220_v24, 0.0  ;;  %vm226_vm2 = vcmp.gt.f32.partialorder %v220_v24, 0.0 }
 0x1c2   :  { %1702 = vpow2.f32 %v231_v26  ;;  %v229_v29 = vmin.f32 %v215_v27, 0.0  ;;  %vm225_vm3 = vcmp.gt.f32.partialorder %v215_v27, 0.0 }
 0x1c3   :  { %v237_v30 = vmul.f32 1.442695, %v230_v28 }
 0x1c4   :  { %v235_v31 = vmul.f32 1.442695, %v229_v29 }
 0x1c5   :  { %1704 = vpow2.f32 %v237_v30 }
 0x1c6   :  { %1706 = vpow2.f32 %v235_v31 }
 0x1cb   :  { %v1701_v32 = vpop.eup %1700 }
 0x1cc   :  { %v1703_v33 = vpop.eup %1702  ;;  %v1065_v34 = vadd.f32 -1.0, %v1701_v32 }
 0x1cd   :  { %v1064_v35 = vadd.f32 -1.0, %v1703_v33 }
 0x1ce   :  { %v244_v39 = vsel %vm224_vm1, %v210_v15, %v1065_v34 }
 0x1cf   :  { %v1705_v36 = vpop.eup %1704  ;;  %v243_v37 = vsel %vm223_vm0, %v205_v17, %v1064_v35 }
 0x1d0   :  { %v1707_v38 = vpop.eup %1706  ;;  %1306 = vmatprep.mubr.f32.mxu1 %v243_v37  ;;  %v1067_v40 = vadd.f32 -1.0, %v1705_v36 }
 0x1d1   :  { %1307 = vmatmul.mubr.f32.vlgmr.msra.gmra.mrb[0].mxu1 %v244_v39  ;;  %v1066_v41 = vadd.f32 -1.0, %v1707_v38 }
 0x1d2   :  { %v246_v42 = vsel %vm226_vm2, %v220_v24, %v1067_v40 }
 0x1d3   :  { %v245_v43 = vsel %vm225_vm3, %v215_v27, %v1066_v41 }
 0x1d4   :  { %1309 = vmatprep.mubr.f32.mxu1 %v245_v43 }
 0x1d5   :  { %1310 = vmatmul.mubr.f32.gmra.mrb[2].mxu1 %v246_v42 }
 0x1d6   :  { %633 = vmatprep.mubr.f32.mxu1 %v471_v53 }
 0x2a4   :  { %v1962_v44 = vpop.f32.mrb[0].mxu1 }
 0x2a5   :  { %v1964_v45 = vpop.f32.mrb[1].mxu1 }
 0x2a6   :  { %v1555_v46 = vpack.i.bf16 %v1962_v44, %v1964_v45  ;;  %v1428_v50 = vpack.c.bf16 %v1962_v44, %v1964_v45 }
 0x2a8   :  { %1556 = vrot.lane.b32.xlu1 %v1555_v46, %s1851_s24  ;;  %1551 = vrot.lane.b32.xlu0 %v1555_v46, %s1850_s23  ;;  %v1969_v47 = vpop.f32.mrb[2].mxu1 }
 0x2a9   :  { %v1971_v48 = vpop.f32.mrb[3].mxu1 }
 0x2aa   :  { %v1615_v49 = vpack.i.bf16 %v1969_v47, %v1971_v48  ;;  %v1432_v51 = vpack.c.bf16 %v1969_v47, %v1971_v48 }
 0x2ac   :  { %1571 = vrot.lane.b32.xlu1 %v1555_v46, %s1852_s25  ;;  %1561 = vrot.lane.b32.xlu0 %v1555_v46, %s1853_s26 }
 0x2b0   :  { %1581 = vrot.lane.b32.xlu1 %v1555_v46, %s1854_s27  ;;  %1566 = vrot.lane.b32.xlu0 %v1555_v46, %s1855_s28 }
 0x2b4   :  { %1591 = vrot.lane.b32.xlu1 %v1555_v46, %s1856_s29  ;;  %1576 = vrot.lane.b32.xlu0 %v1555_v46, %s1847_s1 }
 0x2b8   :  { %1601 = vrot.lane.b32.xlu1 %v1555_v46, %s1857_s0  ;;  %1586 = vrot.lane.b32.xlu0 %v1555_v46, %s1858_s30 }
 0x2bc   :  { %1611 = vrot.lane.b32.xlu1 %v1555_v46, %s1859_s6  ;;  %1596 = vrot.lane.b32.xlu0 %v1555_v46, %s1848_s17 }
 0x2c0   :  { %1606 = vrot.lane.b32.xlu0 %v1555_v46, %s1860_s7  ;;  %1616 = vrot.lane.b32.xlu1 %v1615_v49, %s1850_s23 }
 0x2c4   :  { %1621 = vrot.lane.b32.xlu0 %v1615_v49, %s1851_s24  ;;  %1631 = vrot.lane.b32.xlu1 %v1555_v46, %s1861_s8 }
 0x2c8   :  { %1626 = vrot.lane.b32.xlu0 %v1555_v46, %s1849_s22  ;;  %1636 = vrot.lane.b32.xlu1 %v1615_v49, %s1853_s26 }
 0x2cc   :  { %1641 = vrot.lane.b32.xlu0 %v1615_v49, %s1855_s28  ;;  %1646 = vrot.lane.b32.xlu1 %v1615_v49, %s1852_s25 }
 0x2d0   :  { %1651 = vrot.lane.b32.xlu0 %v1615_v49, %s1847_s1  ;;  %1656 = vrot.lane.b32.xlu1 %v1615_v49, %s1854_s27 }
 0x2d4   :  { %1661 = vrot.lane.b32.xlu0 %v1615_v49, %s1858_s30  ;;  %1666 = vrot.lane.b32.xlu1 %v1615_v49, %s1856_s29 }
 0x2d8   :  { %1671 = vrot.lane.b32.xlu0 %v1615_v49, %s1848_s17  ;;  %1676 = vrot.lane.b32.xlu1 %v1615_v49, %s1857_s0 }
 0x2dc   :  { %1681 = vrot.lane.b32.xlu0 %v1615_v49, %s1860_s7  ;;  %1686 = vrot.lane.b32.xlu1 %v1615_v49, %s1859_s6 }
 0x2e0   :  { %1691 = vrot.lane.b32.xlu0 %v1615_v49, %s1849_s22  ;;  %1696 = vrot.lane.b32.xlu1 %v1615_v49, %s1861_s8 }
 0x31a   :  { %v1557_v54 = vpop.permute.xlu1 %1556  ;;  %v1552_v55 = vpop.permute.xlu0 %1551 }
 0x31b   :  { %v1559_v56 = vunpack.i.h.bf16 %v1557_v54  ;;  %v1558_v57 = vunpack.i.l.bf16 %v1557_v54  ;;  %v1554_v58 = vunpack.i.h.bf16 %v1552_v55  ;;  %v1553_v59 = vunpack.i.l.bf16 %v1552_v55 }
 0x31d   :  { %v1458_v60 = vpack.c.bf16 %v1559_v56, %v1558_v57  ;;  %v1426_v61 = vpack.c.bf16 %v1554_v58, %v1553_v59 }
 0x31e   :  { %v1572_v62 = vpop.permute.xlu1 %1571  ;;  %v1562_v63 = vpop.permute.xlu0 %1561 }
 0x31f   :  { %v1564_v0 = vunpack.i.h.bf16 %v1562_v63  ;;  %v1563_v1 = vunpack.i.l.bf16 %v1562_v63  ;;  %1427 = vmatprep.subr.bf16.mxu0 %v1426_v61  ;;  %1459 = vmatprep.subr.bf16.mxu1 %v1458_v60  ;;  %v1574_v26 = vunpack.i.h.bf16 %v1572_v62  ;;  %v1573_v27 = vunpack.i.l.bf16 %v1572_v62 }
 0x320   :  { %1429 = vmatpush3.bf16.msra.mxu0 %v1428_v50 }
 0x321   :  { %v1460_v2 = vpack.c.bf16 %v1564_v0, %v1563_v1  ;;  %v1466_v36 = vpack.c.bf16 %v1574_v26, %v1573_v27 }
 0x322   :  { %v1582_v3 = vpop.permute.xlu1 %1581  ;;  %v1567_v4 = vpop.permute.xlu0 %1566 }
 0x323   :  { %1461 = vmatpush3.bf16.msra.mxu1 %v1460_v2  ;;  %v1569_v13 = vunpack.i.h.bf16 %v1567_v4  ;;  %v1568_v14 = vunpack.i.l.bf16 %v1567_v4  ;;  %v1584_v33 = vunpack.i.h.bf16 %v1582_v3  ;;  %v1583_v34 = vunpack.i.l.bf16 %v1582_v3 }
 0x325   :  { %v1434_v22 = vpack.c.bf16 %v1569_v13, %v1568_v14  ;;  %v1468_v43 = vpack.c.bf16 %v1584_v33, %v1583_v34 }
 0x326   :  { %v1986_v5 = vpop.permute.xlu1 %1591  ;;  %v1577_v6 = vpop.permute.xlu0 %1576 }
 0x327   :  { %v1579_v18 = vunpack.i.h.bf16 %v1577_v6  ;;  %v1578_v19 = vunpack.i.l.bf16 %v1577_v6  ;;  %v1594_v46 = vunpack.i.h.bf16 %v1986_v5  ;;  %v1593_v47 = vunpack.i.l.bf16 %v1986_v5 }
 0x329   :  { %v1436_v28 = vpack.c.bf16 %v1579_v18, %v1578_v19  ;;  %v1474_v62 = vpack.c.bf16 %v1594_v46, %v1593_v47  ;;  %v468_v46 = vld [vmem:[#allocation5 + $0x10] sm:$0xff]  ;;  %v470_v47 = vld [vmem:[#allocation5 + $0x20] sm:$0xff] }
 0x32a   :  { %v1988_v7 = vpop.permute.xlu1 %1601  ;;  %v1990_v8 = vpop.permute.xlu0 %1586 }
 0x32b   :  { %v1589_v48 = vunpack.i.h.bf16 %v1990_v8  ;;  %v1588_v49 = vunpack.i.l.bf16 %v1990_v8  ;;  %v1604_v56 = vunpack.i.h.bf16 %v1988_v7  ;;  %v1603_v57 = vunpack.i.l.bf16 %v1988_v7 }
 0x32d   :  { %v1442_v63 = vpack.c.bf16 %v1589_v48, %v1588_v49  ;;  %v1476_v6 = vpack.c.bf16 %v1604_v56, %v1603_v57  ;;  %v473_v48 = vld [vmem:[#allocation5 + $0x60] sm:$0xff]  ;;  %v475_v49 = vld [vmem:[#allocation5 + $0x70] sm:$0xff] }
 0x32e   :  { %v1992_v9 = vpop.permute.xlu1 %1611  ;;  %v1994_v10 = vpop.permute.xlu0 %1596  ;;  %v481_v56 = vld [vmem:[#allocation5 + $0xf0] sm:$0xff]  ;;  %v483_v57 = vld [vmem:[#allocation5 + $0x100] sm:$0xff] }
 0x32f   :  { %v1599_v58 = vunpack.i.h.bf16 %v1994_v10  ;;  %v1598_v59 = vunpack.i.l.bf16 %v1994_v10  ;;  %v1614_v10 = vunpack.i.h.bf16 %v1992_v9  ;;  %v1613_v13 = vunpack.i.l.bf16 %v1992_v9 }
 0x331   :  { %v1444_v7 = vpack.c.bf16 %v1599_v58, %v1598_v59  ;;  %v1482_v27 = vpack.c.bf16 %v1614_v10, %v1613_v13  ;;  %v480_v58 = vld [vmem:[#allocation5 + $0xe8] sm:$0xff]  ;;  %v482_v59 = vld [vmem:[#allocation5 + $0xf8] sm:$0xff] }
 0x332   :  { %v1996_v11 = vpop.permute.xlu0 %1606  ;;  %v1617_v12 = vpop.permute.xlu1 %1616 }
 0x333   :  { %v1619_v15 = vunpack.i.h.bf16 %v1617_v12  ;;  %v1618_v16 = vunpack.i.l.bf16 %v1617_v12  ;;  %v1609_v14 = vunpack.i.h.bf16 %v1996_v11 }
 0x335   :  { %v1430_v17 = vpack.c.bf16 %v1619_v15, %v1618_v16  ;;  %v1608_v15 = vunpack.i.l.bf16 %v1996_v11 }
 0x336   :  { %v1622_v20 = vpop.permute.xlu0 %1621  ;;  %v1998_v21 = vpop.permute.xlu1 %1631 }
 0x337   :  { %v1624_v23 = vunpack.i.h.bf16 %v1622_v20  ;;  %v1623_v24 = vunpack.i.l.bf16 %v1622_v20  ;;  %1431 = vmatprep.subr.bf16.mxu0 %v1430_v17 }
 0x338   :  { %1433 = vmatpush3.bf16.msra.mxu0 %v1432_v51 }
 0x339   :  { %v1462_v25 = vpack.c.bf16 %v1624_v23, %v1623_v24  ;;  %1435 = vmatprep.subr.bf16.mxu0 %v1434_v22  ;;  %v1634_v23 = vunpack.i.h.bf16 %v1998_v21  ;;  %v1633_v24 = vunpack.i.l.bf16 %v1998_v21 }
 0x33a   :  { %v2003_v29 = vpop.permute.xlu0 %1626  ;;  %v1637_v30 = vpop.permute.xlu1 %1636 }
 0x33b   :  { %v1639_v31 = vunpack.i.h.bf16 %v1637_v30  ;;  %v1638_v32 = vunpack.i.l.bf16 %v1637_v30  ;;  %1463 = vmatprep.subr.bf16.mxu1 %v1462_v25  ;;  %v1629_v9 = vunpack.i.h.bf16 %v2003_v29  ;;  %v1628_v25 = vunpack.i.l.bf16 %v2003_v29 }
 0x33c   :  { %1437 = vmatpush3.bf16.msra.mxu0 %v1436_v28  ;;  %v1450_v28 = vpack.c.bf16 %v1609_v14, %v1608_v15  ;;  %v1484_v21 = vpack.c.bf16 %v1634_v23, %v1633_v24 }
 0x33d   :  { %v1464_v35 = vpack.c.bf16 %v1639_v31, %v1638_v32 }
 0x33e   :  { %v1642_v37 = vpop.permute.xlu0 %1641  ;;  %v1647_v38 = vpop.permute.xlu1 %1646 }
 0x33f   :  { %v1644_v39 = vunpack.i.h.bf16 %v1642_v37  ;;  %v1643_v40 = vunpack.i.l.bf16 %v1642_v37  ;;  %v1649_v41 = vunpack.i.h.bf16 %v1647_v38  ;;  %v1648_v42 = vunpack.i.l.bf16 %v1647_v38  ;;  %1465 = vmatpush3.bf16.msra.mxu1 %v1464_v35 }
 0x340   :  { %1467 = vmatprep.subr.bf16.mxu1 %v1466_v36  ;;  %v1452_v36 = vpack.c.bf16 %v1629_v9, %v1628_v25 }
 0x341   :  { %v1438_v44 = vpack.c.bf16 %v1644_v39, %v1643_v40  ;;  %v1470_v45 = vpack.c.bf16 %v1649_v41, %v1648_v42 }
 0x342   :  { %v1652_v50 = vpop.permute.xlu0 %1651  ;;  %v1657_v51 = vpop.permute.xlu1 %1656 }
 0x343   :  { %v1654_v52 = vunpack.i.h.bf16 %v1652_v50  ;;  %v1653_v53 = vunpack.i.l.bf16 %v1652_v50  ;;  %v1659_v54 = vunpack.i.h.bf16 %v1657_v51  ;;  %v1658_v55 = vunpack.i.l.bf16 %v1657_v51  ;;  %1439 = vmatprep.subr.bf16.mxu0 %v1438_v44  ;;  %1469 = vmatpush3.bf16.msra.mxu1 %v1468_v43  ;;  %v472_v50 = vld [vmem:[#allocation5 + $0x58] sm:$0xff]  ;;  %v474_v51 = vld [vmem:[#allocation5 + $0x68] sm:$0xff] }
 0x344   :  { %1471 = vmatprep.subr.bf16.mxu1 %v1470_v45 }
 0x345   :  { %v1440_v60 = vpack.c.bf16 %v1654_v52, %v1653_v53  ;;  %v1472_v61 = vpack.c.bf16 %v1659_v54, %v1658_v55  ;;  %v477_v52 = vld [vmem:[#allocation5 + $0xa8] sm:$0xff]  ;;  %v479_v53 = vld [vmem:[#allocation5 + $0xb8] sm:$0xff]  ;;  %v476_v54 = vld [vmem:[#allocation5 + $0xa0] sm:$0xff] }
 0x346   :  { %v1662_v0 = vpop.permute.xlu0 %1661  ;;  %v1667_v1 = vpop.permute.xlu1 %1666  ;;  %v478_v55 = vld [vmem:[#allocation5 + $0xb0] sm:$0xff] }
 0x347   :  { %v1664_v2 = vunpack.i.h.bf16 %v1662_v0  ;;  %v1663_v3 = vunpack.i.l.bf16 %v1662_v0  ;;  %v1669_v4 = vunpack.i.h.bf16 %v1667_v1  ;;  %v1668_v5 = vunpack.i.l.bf16 %v1667_v1  ;;  %1441 = vmatpush3.bf16.msra.mxu0 %v1440_v60  ;;  %1473 = vmatpush3.bf16.msra.mxu1 %v1472_v61  ;;  %v654_v60 = vld [vmem:[#allocation5 + $0x30] sm:$0xff] }
 0x348   :  { %1443 = vmatprep.subr.bf16.mxu0 %v1442_v63  ;;  %1475 = vmatprep.subr.bf16.mxu1 %v1474_v62 }
 0x349   :  { %v1446_v8 = vpack.c.bf16 %v1664_v2, %v1663_v3  ;;  %v1478_v12 = vpack.c.bf16 %v1669_v4, %v1668_v5 }
 0x34a   :  { %v1672_v16 = vpop.permute.xlu0 %1671  ;;  %v1677_v17 = vpop.permute.xlu1 %1676 }
 0x34b   :  { %v1674_v18 = vunpack.i.h.bf16 %v1672_v16  ;;  %v1673_v19 = vunpack.i.l.bf16 %v1672_v16  ;;  %v1679_v20 = vunpack.i.h.bf16 %v1677_v17  ;;  %v1678_v22 = vunpack.i.l.bf16 %v1677_v17  ;;  %1445 = vmatpush3.bf16.msra.mxu0 %v1444_v7  ;;  %1477 = vmatpush3.bf16.msra.mxu1 %v1476_v6 }
 0x34c   :  { %1447 = vmatprep.subr.bf16.mxu0 %v1446_v8  ;;  %1479 = vmatprep.subr.bf16.mxu1 %v1478_v12 }
 0x34d   :  { %v1448_v26 = vpack.c.bf16 %v1674_v18, %v1673_v19  ;;  %v1480_v11 = vpack.c.bf16 %v1679_v20, %v1678_v22 }
 0x34e   :  { %v1682_v30 = vpop.permute.xlu0 %1681  ;;  %v1687_v31 = vpop.permute.xlu1 %1686 }
 0x34f   :  { %v1684_v32 = vunpack.i.h.bf16 %v1682_v30  ;;  %v1683_v33 = vunpack.i.l.bf16 %v1682_v30  ;;  %v1689_v34 = vunpack.i.h.bf16 %v1687_v31  ;;  %v1688_v35 = vunpack.i.l.bf16 %v1687_v31  ;;  %1449 = vmatpush3.bf16.msra.mxu0 %v1448_v26  ;;  %1481 = vmatpush3.bf16.msra.mxu1 %v1480_v11  ;;  %v656_v30 = vld [vmem:[#allocation5 + $0xc0] sm:$0xff]  ;;  %v657_v31 = vld [vmem:[#allocation5 + $0x108] sm:$0xff] }
 0x350   :  { %1451 = vmatprep.subr.bf16.mxu0 %v1450_v28  ;;  %1483 = vmatprep.subr.bf16.mxu1 %v1482_v27  ;;  %v655_v28 = vld [vmem:[#allocation5 + $0x78] sm:$0xff] }
 0x351   :  { %v1454_v37 = vpack.c.bf16 %v1684_v32, %v1683_v33  ;;  %v1486_v38 = vpack.c.bf16 %v1689_v34, %v1688_v35  ;;  %v784_v32 = vld [vmem:[#allocation7] sm:$0xff]  ;;  %v785_v33 = vld [vmem:[#allocation7 + $0x18] sm:$0xff]  ;;  %v786_v34 = vld [vmem:[#allocation7 + $0x30] sm:$0xff] }
 0x352   :  { %v1692_v39 = vpop.permute.xlu0 %1691  ;;  %v1697_v29 = vpop.permute.xlu1 %1696  ;;  %v1498_v35 = vpack.c.bf16 %v785_v33, %v784_v32 }
 0x353   :  { %v1694_v40 = vunpack.i.h.bf16 %v1692_v39  ;;  %v1693_v41 = vunpack.i.l.bf16 %v1692_v39  ;;  %v1699_v42 = vunpack.i.h.bf16 %v1697_v29  ;;  %v1698_v43 = vunpack.i.l.bf16 %v1697_v29  ;;  %1453 = vmatpush3.bf16.msra.mxu0 %v1452_v36  ;;  %1485 = vmatpush3.bf16.msra.mxu1 %v1484_v21  ;;  %v787_v21 = vld [vmem:[#allocation7 + $0x48] sm:$0xff] }
 0x354   :  { %1455 = vmatprep.subr.bf16.mxu0 %v1454_v37  ;;  %1487 = vmatprep.subr.bf16.mxu1 %v1486_v38  ;;  %v1502_v36 = vpack.c.bf16 %v787_v21, %v786_v34  ;;  %v659_v37 = vld [vmem:[#allocation5 + $0x80] sm:$0xff]  ;;  %v658_v38 = vld [vmem:[#allocation5 + $0x38] sm:$0xff] }
 0x355   :  { %v1456_v44 = vpack.c.bf16 %v1694_v40, %v1693_v41  ;;  %v1488_v45 = vpack.c.bf16 %v1699_v42, %v1698_v43  ;;  %v661_v42 = vld [vmem:[#allocation5 + $0x110] sm:$0xff] }
 0x357   :  { %1457 = vmatpush3.bf16.msra.mxu0 %v1456_v44  ;;  %1489 = vmatpush3.bf16.msra.mxu1 %v1488_v45  ;;  %v660_v44 = vld [vmem:[#allocation5 + $0xc8] sm:$0xff] }
 0x358   :  { %1499 = vmatprep.subr.bf16.mxu1 %v1498_v35 }
 0x35a   :  { %549 = vmatmul.mubr.f32.vlgmr.msra.gmra.mrb[4].mxu0 %v468_v46  ;;  %634 = vmatmul.mubr.f32.vlgmr.msra.gmra.mrb[4].mxu1 %v470_v47 }
 0x35b   :  { %553 = vmatprep.mubr.f32.mxu0 %v473_v48  ;;  %638 = vmatprep.mubr.f32.mxu1 %v475_v49 }
 0x35c   :  { %1501 = vmatpush3.bf16.msra.mxu1 %v1498_v35 }
 0x35d   :  { %1503 = vmatprep.subr.bf16.mxu1 %v1502_v36 }
 0x35e   :  { %554 = vmatmul.mubr.f32.gmra.mrb[6].mxu0 %v472_v50  ;;  %639 = vmatmul.mubr.f32.gmra.mrb[6].mxu1 %v474_v51 }
 0x35f   :  { %558 = vmatprep.mubr.f32.mxu0 %v477_v52  ;;  %643 = vmatprep.mubr.f32.mxu1 %v479_v53 }
 0x360   :  { %1505 = vmatpush3.bf16.msra.mxu1 %v1502_v36 }
 0x362   :  { %559 = vmatmul.mubr.f32.gmra.mrb[8].mxu0 %v476_v54  ;;  %644 = vmatmul.mubr.f32.gmra.mrb[8].mxu1 %v478_v55 }
 0x363   :  { %563 = vmatprep.mubr.f32.mxu0 %v481_v56  ;;  %648 = vmatprep.mubr.f32.mxu1 %v483_v57 }
 0x366   :  { %564 = vmatmul.mubr.f32.gmra.mrb[10].mxu0 %v480_v58  ;;  %649 = vmatmul.mubr.f32.gmra.mrb[10].mxu1 %v482_v59 }
 0x367   :  { %1320 = vmatprep.mubr.msk.f32.mxu0 %vm662_vm4, %v654_v60 }
 0x42d   :  { %v1154_v61 = vpop.f32.mrb[4].mxu0  ;;  %v1198_v62 = vpop.f32.mrb[4].mxu1 }
 0x42e   :  { %v1155_v63 = vpop.f32.mrb[5].mxu0  ;;  %v1199_v0 = vpop.f32.mrb[5].mxu1 }
 0x42f   :  { %v1156_v1 = vadd.f32 %v1155_v63, %v1154_v61  ;;  %v1200_v2 = vadd.f32 %v1199_v0, %v1198_v62 }
 0x431   :  { %v636_v3 = vadd.f32 %v1200_v2, %v1156_v1  ;;  %v1157_v4 = vpop.f32.mrb[6].mxu0  ;;  %v1201_v5 = vpop.f32.mrb[6].mxu1 }
 0x432   :  { %v1158_v6 = vpop.f32.mrb[7].mxu0  ;;  %v1202_v7 = vpop.f32.mrb[7].mxu1 }
 0x433   :  { %v1159_v8 = vadd.f32 %v1158_v6, %v1157_v4  ;;  %v1203_v12 = vadd.f32 %v1202_v7, %v1201_v5  ;;  %v1862_v4 = vmov 0.0|0.0   ;;  %v1864_v5 = vmov 0.0   ;;  %v967_v6 = vld [vmem:[#allocation7 + $0x8] sm:$0xff]  ;;  %v968_v7 = vld [vmem:[#allocation7 + $0x20] sm:$0xff] }
 0x434   :  { %1512 = vmatprep.subr.bf16.mxu1 %v1862_v4 }
 0x435   :  { %v641_v10 = vadd.f32 %v1203_v12, %v1159_v8  ;;  %v1160_v13 = vpop.f32.mrb[8].mxu0  ;;  %v1204_v14 = vpop.f32.mrb[8].mxu1  ;;  %v969_v8 = vld [vmem:[#allocation7 + $0x38] sm:$0xff]  ;;  %v1513_v12 = vpack.c.bf16 %v968_v7, %v967_v6 }
 0x436   :  { %v1161_v15 = vpop.f32.mrb[9].mxu0  ;;  %v1205_v16 = vpop.f32.mrb[9].mxu1 }
 0x437   :  { %v1162_v17 = vadd.f32 %v1161_v15, %v1160_v13  ;;  %v1206_v18 = vadd.f32 %v1205_v16, %v1204_v14  ;;  %v1490_v19 = vpack.c.bf16 %v641_v10, %v636_v3  ;;  %v970_v10 = vld [vmem:[#allocation7 + $0x50] sm:$0xff]  ;;  %v886_v14 = vld [vmem:[#allocation5 + $0x88] sm:$0xff]  ;;  %v885_v15 = vld [vmem:[#allocation5 + $0x40] sm:$0xff] }
 0x438   :  { %v1516_v13 = vpack.c.bf16 %v970_v10, %v969_v8 }
 0x439   :  { %v646_v20 = vadd.f32 %v1206_v18, %v1162_v17  ;;  %v1163_v22 = vpop.f32.mrb[10].mxu0  ;;  %v1207_v23 = vpop.f32.mrb[10].mxu1  ;;  %1491 = vmatprep.subr.bf16.mxu0 %v1490_v19 }
 0x43a   :  { %v1164_v24 = vpop.f32.mrb[11].mxu0  ;;  %v1208_v9 = vpop.f32.mrb[11].mxu1  ;;  %1493 = vmatpush3.bf16.msra.mxu0 %v1490_v19 }
 0x43b   :  { %v1165_v25 = vadd.f32 %v1164_v24, %v1163_v22  ;;  %v1209_v26 = vadd.f32 %v1208_v9, %v1207_v23  ;;  %v887_v22 = vld [vmem:[#allocation5 + $0xd0] sm:$0xff] }
 0x43d   :  { %v651_v11 = vadd.f32 %v1209_v26, %v1165_v25 }
 0x43f   :  { %v1494_v27 = vpack.c.bf16 %v651_v11, %v646_v20  ;;  %v888_v20 = vld [vmem:[#allocation5 + $0x118] sm:$0xff] }
 0x441   :  { %1495 = vmatprep.subr.bf16.mxu0 %v1494_v27 }
 0x442   :  { %1497 = vmatpush3.bf16.msra.mxu0 %v1494_v27  ;;  %v893_v27 = vld [vmem:[%s2053_s4] sm:$0x3] }
 0x443   :  { %1506 = vmatprep.subr.bf16.mxu0 %v1862_v4 }
 0x445   :  { %1321 = vmatmul.mubr.msk.f32.vlgmr.msra.gmra.mrb[12].mxu0 %vm662_vm4, %v655_v28 }
 0x446   :  { %1323 = vmatprep.mubr.msk.f32.mxu0 %vm662_vm4, %v656_v30 }
 0x449   :  { %1324 = vmatmul.mubr.msk.f32.gmra.mrb[14].mxu0 %vm662_vm4, %v657_v31  ;;  %v971_v31 = vld [vmem:[%s2053_s4 + $0x2] sm:$0x3] }
 0x44a   :  { %1348 = vmatprep.mubr.msk.f32.mxu0 %vm1863_vm9, %v1864_v5 }
 0x518   :  { %v1322_v39 = vpop.f32.mrb[12].mxu0 }
 0x519   :  { %v747_v29 = vadd.f32 %v1322_v39, %v659_v37  ;;  %v741_v40 = vpop.f32.mrb[13].mxu0 }
 0x51a   :  { %v742_v41 = vadd.f32 %v741_v40, %v658_v38 }
 0x51b   :  { %v765_v43 = vmin.f32 %v747_v29, 0.0  ;;  %vm761_vm6 = vcmp.gt.f32.partialorder %v747_v29, 0.0 }
 0x51c   :  { %v764_v45 = vmin.f32 %v742_v41, 0.0  ;;  %v1325_v46 = vpop.f32.mrb[14].mxu0  ;;  %vm760_vm5 = vcmp.gt.f32.partialorder %v742_v41, 0.0 }
 0x51d   :  { %v770_v47 = vmul.f32 1.442695, %v765_v43  ;;  %v757_v48 = vadd.f32 %v1325_v46, %v661_v42  ;;  %v751_v49 = vpop.f32.mrb[15].mxu0 }
 0x51e   :  { %v768_v50 = vmul.f32 1.442695, %v764_v45  ;;  %v752_v51 = vadd.f32 %v751_v49, %v660_v44 }
 0x51f   :  { %1708 = vpow2.f32 %v770_v47  ;;  %v767_v52 = vmin.f32 %v757_v48, 0.0  ;;  %vm763_vm8 = vcmp.gt.f32.partialorder %v757_v48, 0.0 }
 0x520   :  { %1710 = vpow2.f32 %v768_v50  ;;  %v766_v53 = vmin.f32 %v752_v51, 0.0  ;;  %vm762_vm7 = vcmp.gt.f32.partialorder %v752_v51, 0.0 }
 0x521   :  { %v774_v54 = vmul.f32 1.442695, %v767_v52 }
 0x522   :  { %v772_v55 = vmul.f32 1.442695, %v766_v53 }
 0x523   :  { %1712 = vpow2.f32 %v774_v54 }
 0x524   :  { %1714 = vpow2.f32 %v772_v55 }
 0x529   :  { %v1709_v56 = vpop.eup %1708 }
 0x52a   :  { %v1711_v57 = vpop.eup %1710  ;;  %v1073_v58 = vadd.f32 -1.0, %v1709_v56 }
 0x52b   :  { %v1072_v59 = vadd.f32 -1.0, %v1711_v57 }
 0x52c   :  { %v781_v63 = vsel %vm761_vm6, %v747_v29, %v1073_v58 }
 0x52d   :  { %v1713_v60 = vpop.eup %1712  ;;  %v780_v61 = vsel %vm760_vm5, %v742_v41, %v1072_v59 }
 0x52e   :  { %v1715_v62 = vpop.eup %1714  ;;  %1334 = vmatprep.mubr.msk.f32.mxu1 %vm662_vm4, %v780_v61  ;;  %v1075_v0 = vadd.f32 -1.0, %v1713_v60 }
 0x52f   :  { %1335 = vmatmul.mubr.msk.f32.vlgmr.msra.gmra.mrb[12].mxu1 %vm662_vm4, %v781_v63  ;;  %v1074_v1 = vadd.f32 -1.0, %v1715_v62 }
 0x530   :  { %v783_v3 = vsel %vm763_vm8, %v757_v48, %v1075_v0  ;;  %1514 = vmatpush3.bf16.msra.mxu1 %v1513_v12 }
 0x531   :  { %v782_v2 = vsel %vm762_vm7, %v752_v51, %v1074_v1  ;;  %1515 = vmatprep.subr.bf16.mxu1 %v1862_v4 }
 0x532   :  { %1337 = vmatprep.mubr.msk.f32.mxu1 %vm662_vm4, %v782_v2 }
 0x533   :  { %1338 = vmatmul.mubr.msk.f32.gmra.mrb[14].mxu1 %vm662_vm4, %v783_v3 }
 0x534   :  { %1359 = vmatprep.mubr.msk.f32.mxu1 %vm1863_vm9, %v1864_v5  ;;  %1517 = vmatpush3.bf16.msra.mxu1 %v1516_v13 }
 0x602   :  { %v1336_v16 = vpop.f32.mrb[12].mxu1 }
 0x603   :  { %v890_v17 = vmul.f32 %v1336_v16, %v886_v14  ;;  %v866_v18 = vpop.f32.mrb[13].mxu1 }
 0x604   :  { %v889_v19 = vmul.f32 %v885_v15, %v866_v18 }
 0x606   :  { %v1507_v23 = vpack.c.bf16 %v890_v17, %v889_v19  ;;  %v1339_v24 = vpop.f32.mrb[14].mxu1 }
 0x607   :  { %v892_v9 = vmul.f32 %v1339_v24, %v888_v20  ;;  %v876_v25 = vpop.f32.mrb[15].mxu1 }
 0x608   :  { %v891_v26 = vmul.f32 %v887_v22, %v876_v25  ;;  %1508 = vmatpush3.bf16.msra.mxu0 %v1507_v23 }
 0x609   :  { %1509 = vmatprep.subr.bf16.mxu0 %v1862_v4 }
 0x60a   :  { %v1510_v11 = vpack.c.bf16 %v892_v9, %v891_v26 }
 0x60c   :  { %1511 = vmatpush3.bf16.msra.mxu0 %v1510_v11 }
 0x60f   :  { %1349 = vmatmul.mubr.msk.f32.vlgmr.msra.gmra.mrb[16].mxu0 %vm662_vm4, %v893_v27 }
 0x6e2   :  { %v963_v28 = vpop.f32.mrb[16].mxu0 }
 0x6e3   :  { %v1350_v30 = vpop.f32.mrb[17].mxu0  ;;  %1360 = vmatmul.mubr.msk.f32.vlgmr.msra.gmra.mrb[16].mxu1 %vm662_vm4, %v963_v28 }
 0x7b6   :  { %v1041_v32 = vpop.f32.mrb[16].mxu1 }
 0x7b7   :  { %v1042_v33 = vadd.f32 %v1041_v32, %v971_v31  ;;  %v1361_v34 = vpop.f32.mrb[17].mxu1 }
 0x7b9   :  { %1046 = vst.msk [vmem:[#allocation10] sm:$0x3] %vm1045_vm10, %v1042_v33 }
 0x7ba   :  { %1815 = shalt.err (!%p1812_p8)
}
 0x7bb   :  { %s1816_s2 = scalar_lea.hbm %s2054_s5, 32 }
 0x7bc   :  { %p1817_p9 = scmp.ne.s32.totalorder %s2054_s5, %s1816_s2  ;;  %p1820_p10 = scmp.lt.u32.totalorder %s1816_s2, %s2054_s5 }
 0x7be   :  { %p1822_p11 = pnand %p1820_p10, %p1817_p9 }
 0x7c0   :  { %1825 = shalt.err (!%p1822_p11)
}
 0x7c1   :  { %1056 = dma.vmem_to_hbm [thread:$0]  %s1054_s14, 32, %s2054_s5, [#allocation4]  }
 0x7c2   :  { %1832 = dma.done.wait [#allocation4], 32  }
 0x7c3   :  { %1833 = vsyncadd [#allocation4], 4294967264 }
 0x7c4   :  { %1060 = vsyncpa [#allocation3], 1 }
 0x7c5   :  { %1061 = vsyncpa [#allocation6], 1 }
 0x7c6   :  { %1062 = vsyncpa [#allocation9], 1 }
 0x7c7   :  { %1063 = vsyncpa [#allocation4], 1 }

</bundles_post_ra>
